<compile_context>
chip_gen: v6e
topology: v6e:2x2x1
jax: 0.10.0
libtpu: 0.0.40
codegen_flags: <defaults>
</compile_context>

<pallas_src>
import functools
import math

import jax
import jax.numpy as jnp
from jax.experimental import pallas as pl
from jax.experimental.pallas import tpu as pltpu

LN2 = 0.69314718  # exact constant used by the original module's rbf()


def _round_up(v: int, m: int) -> int:
    return ((v + m - 1) // m) * m


# ---------------------------------------------------------------------------
# Pallas kernel: RBF expansion + projection (accumulated over grid-point tiles)
# ---------------------------------------------------------------------------
def _rbf_euclidean_kernel(x_ref, grid_t_ref, coeffs_ref, o_ref, acc_ref, *,
                          scale, d_dim):
    g = pl.program_id(1)

    @pl.when(g == 0)
    def _init():
        acc_ref[...] = jnp.zeros_like(acc_ref)

    x = x_ref[...].astype(jnp.float32)         # [TB, D]   (D tiny)
    gt = grid_t_ref[...].astype(jnp.float32)   # [D, TG]

    # Direct (x - g)^2 accumulation over the (small) domain dim: pure VPU,
    # no cross-lane reductions, numerically exact (no cancellation).
    diff = x[:, 0:1] - gt[0:1, :]              # [TB, TG] broadcast
    d2 = diff * diff
    for d in range(1, d_dim):                  # static unroll, d_dim is tiny
        diff = x[:, d:d + 1] - gt[d:d + 1, :]
        d2 = d2 + diff * diff

    # rbf(dist, width) = exp(-dist^2 * ln2 / width^2)   (EUP-bound term)
    p = jnp.exp(-d2 * scale)                   # [TB, TG], values in (0, 1]

    # bf16 operands -> ~2x MXU throughput on v6e/v7x; f32 accumulation.
    acc_ref[...] += jnp.dot(
        p.astype(jnp.bfloat16),
        coeffs_ref[...].astype(jnp.bfloat16),
        preferred_element_type=jnp.float32,
    )

    @pl.when(g == pl.num_programs(1) - 1)
    def _finalize():
        o_ref[...] = acc_ref[...].astype(o_ref.dtype)


# ---------------------------------------------------------------------------
# Wrapper: padding / tiling glue around the pallas_call
# ---------------------------------------------------------------------------
def rbf_euclidean_forward(x, grid, coeffs, rbf_width, *, tb=256, tg=512):
    """x: [B, D], grid: [G, D], coeffs: [G, C] -> [B, C] (float32)."""
    B, D = x.shape
    G, C = coeffs.shape
    scale = LN2 / (float(rbf_width) ** 2)

    # --- tile sizes / padded shapes -------------------------------------
    Cp = _round_up(C, 128)                     # lane-dense output width
    tb = min(tb, _round_up(B, 8))              # batch tile (multiple of 8)
    Bp = _round_up(B, tb)
    if G <= tg:                                # small grid: single resident tile
        tg = G
        Gp = G
    else:                                      # large grid: 128-aligned tiles
        tg = _round_up(tg, 128)
        Gp = _round_up(G, tg)

    x_p = jnp.pad(x, ((0, Bp - B), (0, 0)))
    grid_t = jnp.transpose(grid)                               # [D, G]
    grid_t_p = jnp.pad(grid_t, ((0, 0), (0, Gp - G)))
    coeffs_p = jnp.pad(coeffs, ((0, Gp - G), (0, Cp - C)))     # zero rows/cols

    nb = Bp // tb
    ng = Gp // tg

    cost = pl.CostEstimate(
        flops=2 * Bp * Gp * Cp + 3 * Bp * Gp * D,
        transcendentals=Bp * Gp,
        bytes_accessed=4 * (Bp * D + D * Gp + Gp * Cp + Bp * Cp),
    )

    out_p = pl.pallas_call(
        functools.partial(_rbf_euclidean_kernel, scale=scale, d_dim=D),
        out_shape=jax.ShapeDtypeStruct((Bp, Cp), jnp.float32),
        grid_spec=pltpu.PrefetchScalarGridSpec(
            num_scalar_prefetch=0,
            grid=(nb, ng),
            in_specs=[
                pl.BlockSpec((tb, D), lambda i, g: (i, 0)),   # x tile
                pl.BlockSpec((D, tg), lambda i, g: (0, g)),   # grid (transposed)
                pl.BlockSpec((tg, Cp), lambda i, g: (g, 0)),  # coeffs tile
            ],
            out_specs=pl.BlockSpec((tb, Cp), lambda i, g: (i, 0)),
            scratch_shapes=[pltpu.VMEM((tb, Cp), jnp.float32)],
        ),
        compiler_params=pltpu.CompilerParams(
            dimension_semantics=("parallel", "arbitrary"),
            vmem_limit_bytes=64 * 1024 * 1024,
        ),
        cost_estimate=cost,
    )(x_p, grid_t_p, coeffs_p)

    return out_p[:B, :C]


# ---------------------------------------------------------------------------
# Module setup (plain JAX glue, mirrors RBF_euclidean.__init__)
# ---------------------------------------------------------------------------
def make_rbf_euclidean(domain_min, domain_max, n, codomain_dim, key):
    domain_dim = len(domain_min)
    axes = [
        jnp.linspace(domain_min[i], domain_max[i], n[i], dtype=jnp.float32)
        for i in range(domain_dim)
    ]
    mesh = jnp.meshgrid(*axes, indexing="ij")  # torch.meshgrid default is 'ij'
    grid = jnp.stack(mesh, axis=-1).reshape(-1, domain_dim)   # [G, D]
    G = grid.shape[0]

    # Deterministic "randn" weight (synthetic init, no checkpoint load).
    weight = jax.random.normal(key, (G, codomain_dim), dtype=jnp.float32)

    # Pairwise grid distances -> rbf width = mean nearest-neighbor distance.
    diff = grid[:, None, :] - grid[None, :, :]
    dist = jnp.sqrt(jnp.sum(diff * diff, axis=-1))            # [G, G]
    rbf_width = jnp.mean(jnp.sort(dist, axis=1)[:, 1])

    # Interpolation matrix and coefficients (solve done in plain JAX setup).
    m = jnp.exp(-(dist ** 2) / (rbf_width ** 2 / LN2))
    coeffs = jnp.linalg.solve(m, weight)                      # [G, C]

    return grid, coeffs, float(rbf_width)


if __name__ == "__main__":
    key = jax.random.PRNGKey(0)
    k_w, k_x = jax.random.split(key)

    # Small deterministic configuration: 2-D domain, 8x8 grid (G=64), C=8.
    domain_min = [-1.0, -1.0]
    domain_max = [1.0, 1.0]
    n = [8, 8]
    codomain_dim = 8
    batch = 16

    grid, coeffs, rbf_width = make_rbf_euclidean(
        domain_min, domain_max, n, codomain_dim, k_w
    )

    # Input points x: [B, domain_dim]
    x = jax.random.uniform(
        k_x, (batch, len(domain_min)), dtype=jnp.float32, minval=-1.0, maxval=1.0
    )

    out = rbf_euclidean_forward(x, grid, coeffs, rbf_width)
    jax.block_until_ready(out)
    assert out.shape == (batch, codomain_dim)
    assert out.dtype == jnp.float32
    print("KERNEL_OK")
</pallas_src>

<mosaic_0001>
module attributes {stable_mosaic.version = 11 : i64} {
  func.func @_rbf_euclidean_kernel(%arg0: i32, %arg1: i32, %arg2: memref<16x2xf32, #tpu.memory_space<vmem>>, %arg3: memref<2x64xf32, #tpu.memory_space<vmem>>, %arg4: memref<64x128xf32, #tpu.memory_space<vmem>>, %arg5: memref<16x128xf32, #tpu.memory_space<vmem>>, %arg6: memref<16x128xf32, #tpu.memory_space<vmem>>) attributes {dimension_semantics = [#tpu.dimension_semantics<parallel>, #tpu.dimension_semantics<arbitrary>], iteration_bounds = array<i64: 1, 1>, scalar_prefetch = 0 : i64, scratch_operands = 1 : i64, tpu.core_type = #tpu.core_type<tc>, window_params = [{transform_indices = @transform_0, window_bounds = array<i64: 16, 2>}, {transform_indices = @transform_1, window_bounds = array<i64: 2, 64>}, {transform_indices = @transform_2, window_bounds = array<i64: 64, 128>}, {transform_indices = @transform_3, window_bounds = array<i64: 16, 128>}]} {
    %c0_i32 = arith.constant 0 : i32
    %0 = arith.cmpi eq, %arg1, %c0_i32 : i32
    %1 = arith.extui %0 : i1 to i32
    %c0_i32_0 = arith.constant 0 : i32
    %2 = arith.cmpi ne, %1, %c0_i32_0 : i32
    scf.if %2 {
      %cst_14 = arith.constant 0.000000e+00 : f32
      %33 = vector.broadcast %cst_14 : f32 to vector<16x128xf32>
      %c0_15 = arith.constant 0 : index
      %c0_16 = arith.constant 0 : index
      %34 = vector.load %arg6[%c0_15, %c0_16] : memref<16x128xf32, #tpu.memory_space<vmem>>, vector<16x128xf32>
      tpu.vector_store %arg6[%c0_15, %c0_16], %33 {strides = array<i32>} : memref<16x128xf32, #tpu.memory_space<vmem>>, vector<16x128xf32>,
    } else {
    }
    %c0 = arith.constant 0 : index
    %c0_1 = arith.constant 0 : index
    %3 = vector.load %arg2[%c0, %c0_1] : memref<16x2xf32, #tpu.memory_space<vmem>>, vector<16x2xf32>
    %c0_2 = arith.constant 0 : index
    %c0_3 = arith.constant 0 : index
    %4 = vector.load %arg3[%c0_2, %c0_3] : memref<2x64xf32, #tpu.memory_space<vmem>>, vector<2x64xf32>
    %5 = vector.extract_strided_slice %3 {offsets = [0, 0], sizes = [16, 1], strides = [1, 1]} : vector<16x2xf32> to vector<16x1xf32>
    %6 = vector.extract_strided_slice %4 {offsets = [0, 0], sizes = [1, 64], strides = [1, 1]} : vector<2x64xf32> to vector<1x64xf32>
    %7 = vector.broadcast %5 : vector<16x1xf32> to vector<16x64xf32>
    %8 = vector.broadcast %6 : vector<1x64xf32> to vector<16x64xf32>
    %9 = arith.subf %7, %8 : vector<16x64xf32>
    %10 = arith.mulf %9, %9 : vector<16x64xf32>
    %11 = vector.extract_strided_slice %3 {offsets = [0, 1], sizes = [16, 1], strides = [1, 1]} : vector<16x2xf32> to vector<16x1xf32>
    %12 = vector.extract_strided_slice %4 {offsets = [1, 0], sizes = [1, 64], strides = [1, 1]} : vector<2x64xf32> to vector<1x64xf32>
    %13 = vector.broadcast %11 : vector<16x1xf32> to vector<16x64xf32>
    %14 = vector.broadcast %12 : vector<1x64xf32> to vector<16x64xf32>
    %15 = arith.subf %13, %14 : vector<16x64xf32>
    %16 = arith.mulf %15, %15 : vector<16x64xf32>
    %17 = arith.addf %10, %16 : vector<16x64xf32>
    %cst = arith.constant 0.000000e+00 : f32
    %18 = vector.broadcast %cst : f32 to vector<16x64xf32>
    %19 = arith.subf %18, %17 : vector<16x64xf32>
    %cst_4 = arith.constant 8.4910593 : f32
    %20 = vector.broadcast %cst_4 : f32 to vector<16x64xf32>
    %21 = arith.mulf %19, %20 : vector<16x64xf32>
    %22 = math.exp %21 : vector<16x64xf32>
    %c0_5 = arith.constant 0 : index
    %c0_6 = arith.constant 0 : index
    %23 = vector.load %arg6[%c0_5, %c0_6] : memref<16x128xf32, #tpu.memory_space<vmem>>, vector<16x128xf32>
    %24 = arith.truncf %22 : vector<16x64xf32> to vector<16x64xbf16>
    %c0_7 = arith.constant 0 : index
    %c0_8 = arith.constant 0 : index
    %25 = vector.load %arg4[%c0_7, %c0_8] : memref<64x128xf32, #tpu.memory_space<vmem>>, vector<64x128xf32>
    %26 = arith.truncf %25 : vector<64x128xf32> to vector<64x128xbf16>
    %cst_9 = arith.constant dense<0.000000e+00> : vector<16x128xf32>
    %27 = tpu.matmul %24, %26, %cst_9 {dimension_numbers = #tpu.dot_dimension_numbers<[1], [0], [0], [1], [0, 0, 1, 1], [], []>} : vector<16x64xbf16>, vector<64x128xbf16>, vector<16x128xf32> -> vector<16x128xf32>
    %28 = arith.addf %23, %27 : vector<16x128xf32>
    %c0_10 = arith.constant 0 : index
    %c0_11 = arith.constant 0 : index
    %29 = vector.load %arg6[%c0_10, %c0_11] : memref<16x128xf32, #tpu.memory_space<vmem>>, vector<16x128xf32>
    tpu.vector_store %arg6[%c0_10, %c0_11], %28 {strides = array<i32>} : memref<16x128xf32, #tpu.memory_space<vmem>>, vector<16x128xf32>,
    %c0_i32_12 = arith.constant 0 : i32
    %30 = arith.cmpi eq, %arg1, %c0_i32_12 : i32
    %31 = arith.extui %30 : i1 to i32
    %c0_i32_13 = arith.constant 0 : i32
    %32 = arith.cmpi ne, %31, %c0_i32_13 : i32
    scf.if %32 {
      %c0_14 = arith.constant 0 : index
      %c0_15 = arith.constant 0 : index
      %33 = vector.load %arg6[%c0_14, %c0_15] : memref<16x128xf32, #tpu.memory_space<vmem>>, vector<16x128xf32>
      %c0_16 = arith.constant 0 : index
      %c0_17 = arith.constant 0 : index
      %34 = vector.load %arg5[%c0_16, %c0_17] : memref<16x128xf32, #tpu.memory_space<vmem>>, vector<16x128xf32>
      tpu.vector_store %arg5[%c0_16, %c0_17], %33 {strides = array<i32>} : memref<16x128xf32, #tpu.memory_space<vmem>>, vector<16x128xf32>,
    } else {
    }
    return
  }
  func.func @transform_0(%arg0: i32, %arg1: i32) -> (i32, i32) {
    %c0_i32 = arith.constant 0 : i32
    %c0_i32_0 = arith.constant 0 : i32
    return %arg0, %c0_i32 : i32, i32
  }
  func.func @transform_1(%arg0: i32, %arg1: i32) -> (i32, i32) {
    %c0_i32 = arith.constant 0 : i32
    %c0_i32_0 = arith.constant 0 : i32
    return %c0_i32, %arg1 : i32, i32
  }
  func.func @transform_2(%arg0: i32, %arg1: i32) -> (i32, i32) {
    %c0_i32 = arith.constant 0 : i32
    %c0_i32_0 = arith.constant 0 : i32
    return %arg1, %c0_i32 : i32, i32
  }
  func.func @transform_3(%arg0: i32, %arg1: i32) -> (i32, i32) {
    %c0_i32 = arith.constant 0 : i32
    %c0_i32_0 = arith.constant 0 : i32
    return %arg0, %c0_i32 : i32, i32
  }
}

</mosaic_0001>

<bundles_post_ra>
// kernel: tpu_custom_call.1
= control target key start
LH: loop header
LB: loop body
LE: loop exit
PB: predicated region body
PF: predicated region fallthrough
CT: control target
= control target key end

     0   :  { %8 = vsyncpa [#allocation4], 0  ;;  %s297_s0 = inlined_call_operand.vmem [shape: f32[16,2], index: 0, kind: input, shape index: {}]   ;;  %s298_s1 = inlined_call_operand.vmem [shape: f32[2,64], index: 1, kind: input, shape index: {}]   ;;  %s299_s2 = inlined_call_operand.hbm [shape: f32[64,128], index: 2, kind: input, shape index: {}]   ;;  %s300_s3 = inlined_call_operand.hbm [shape: f32[16,128], index: 3, kind: output, shape index: {}]  }
   0x1   :  { %9 = vsyncpa [#allocation5], 0  ;;  %s248_s12 = smov [#allocation3]  }
   0x2   :  { %s19_s13 = sshll.u32 %s248_s12, 4  ;;  %s20_s13 = int_to_ptr.vmem [resolvable:$true] %s19_s13 }
   0x3   :  { %s212_s14 = scalar_lea.vmem %s20_s13, 1024  ;;  %p217_p1 = scmp.lt.s32.totalorder %s20_s13, %s20_s13 }
   0x4   :  { %p213_p0 = scmp.ne.s32.totalorder %s20_s13, %s212_s14  ;;  %p218_p2 = scmp.lt.s32.totalorder %s212_s14, %s212_s14 }
   0x6   :  { %p219_p3 = por %p218_p2, %p217_p1 }
   0x8   :  { %p220_p4 = pnand %p219_p3, %p213_p0 }
   0xa   :  { %223 = shalt.err (!%p220_p4)
}
   0xb   :  { %s249_s15 = smov 128   ;;  %s250_s16 = smov 8  }
   0xc   :  { %25 = dma.hbm_to_vmem [thread:$0]  %s299_s2, 1024, %s20_s13, [#allocation4], %s249_s15, %s249_s15, %s250_s16  }
   0xd   :  { %244 = dma.done.wait [#allocation4], 1024  }
   0xe   :  { %245 = vsyncadd [#allocation4], 4294966272  ;;  %v251_v0 = vmov 1   ;;  %v252_v1 = vmov 0   ;;  %v36_v2 = vld [vmem:[%s297_s0] sm:$0xff]  ;;  %v37_v3 = vld [vmem:[%s297_s0 + $0x8] sm:$0xff]  ;;  %v49_v17 = vlaneseq }
   0xf   :  { %198 = vset.pattern.permute.xlu1 %v251_v0  ;;  %197 = vset.pattern.permute.xlu0 %v252_v1  ;;  %v92_v4 = vld [vmem:[#allocation3 + $0x30] sm:$0xff]  ;;  %v93_v5 = vld [vmem:[#allocation3 + $0x38] sm:$0xff]  ;;  %v253_v7 = vmov 0.0   ;;  %v90_v8 = vld [vmem:[#allocation3 + $0x20] sm:$0xff]  ;;  %vm254_vm0 = vmmov 0   ;;  %vm98_vm1 = vcmask 523264  }
  0x10   :  { %58 = vperm.xlu1 %198, %v36_v2   ;;  %41 = vperm.xlu0 %197, %v36_v2   ;;  %v97_v6 = vpack.c.bf16 %v93_v5, %v92_v4  ;;  %v91_v9 = vld [vmem:[#allocation3 + $0x28] sm:$0xff]  ;;  %v88_v11 = vld [vmem:[#allocation3 + $0x10] sm:$0xff]  ;;  %v89_v12 = vld [vmem:[#allocation3 + $0x18] sm:$0xff]  ;;  %v50_v18 = vshrl.u32 %v49_v17, 7 }
  0x11   :  { %177 = vmatprep.subr.bf16.mxu0 %v253_v7  ;;  %v96_v10 = vpack.c.bf16 %v91_v9, %v90_v8  ;;  %185 = vmatprep.mubr.msk.bf16.mxu0 %vm254_vm0, %v253_v7  ;;  %v95_v13 = vpack.c.bf16 %v89_v12, %v88_v11  ;;  %v86_v14 = vld [vmem:[#allocation3] sm:$0xff]  ;;  %v87_v15 = vld [vmem:[#allocation3 + $0x8] sm:$0xff] }
  0x12   :  { %178 = vmatpush3.bf16.msra.mxu0 %v97_v6  ;;  %v94_v16 = vpack.c.bf16 %v87_v15, %v86_v14  ;;  %v67_v19 = vsub.s32 1, %v50_v18  ;;  %v51_v20 = vsub.s32 0, %v50_v18  ;;  %v38_v21 = vld [vmem:[%s298_s1] sm:$0x3]  ;;  %s255_s1 = smov [#allocation6]  }
  0x13   :  { %179 = vmatprep.subr.bf16.mxu0 %v253_v7  ;;  %s159_s23 = sshll.u32 %s255_s1, 4  ;;  %s160_s23 = int_to_ptr.vmem [resolvable:$true] %s159_s23 }
  0x14   :  { %62 = vperm.xlu1 %198, %v37_v3   ;;  %46 = vperm.xlu0 %197, %v37_v3   ;;  %v68_v22 = vrot.slane %v38_v21, %v67_v19  ;;  %v52_v23 = vrot.slane %v38_v21, %v51_v20  ;;  %s224_s24 = scalar_lea.vmem %s160_s23, 256  ;;  %p229_p6 = scmp.lt.s32.totalorder %s160_s23, %s160_s23 }
  0x15   :  { %p225_p5 = scmp.ne.s32.totalorder %s160_s23, %s224_s24  ;;  %p230_p7 = scmp.lt.s32.totalorder %s224_s24, %s224_s24 }
  0x16   :  { %180 = vmatpush3.bf16.msra.mxu0 %v96_v10 }
  0x17   :  { %181 = vmatprep.subr.bf16.mxu0 %v253_v7  ;;  %p231_p8 = por %p230_p7, %p229_p6 }
  0x18   :  { %199 = vset.pattern.permute.xlu0 %v251_v0 }
  0x19   :  { %p232_p9 = pnand %p231_p8, %p225_p5 }
  0x1a   :  { %182 = vmatpush3.bf16.msra.mxu0 %v95_v13 }
  0x1b   :  { %183 = vmatprep.subr.bf16.mxu0 %v253_v7 }
  0x1e   :  { %184 = vmatpush3.bf16.msra.mxu0 %v94_v16 }
  0x8b   :  { %v59_v24 = vpop.permute.xlu1 %58  ;;  %v42_v25 = vpop.permute.xlu0 %41 }
  0x8c   :  { %v69_v26 = vsub.f32 %v59_v24, %v68_v22  ;;  %v53_v27 = vsub.f32 %v42_v25, %v52_v23 }
  0x8e   :  { %v71_v28 = vmul.f32 %v69_v26, %v69_v26  ;;  %v55_v29 = vmul.f32 %v53_v27, %v53_v27 }
  0x8f   :  { %v63_v30 = vpop.permute.xlu1 %62  ;;  %v47_v31 = vpop.permute.xlu0 %46 }
  0x90   :  { %v73_v32 = vadd.f32 %v71_v28, %v55_v29  ;;  %v70_v33 = vsub.f32 %v63_v30, %v68_v22  ;;  %v54_v34 = vsub.f32 %v47_v31, %v52_v23 }
  0x92   :  { %v75_v35 = vsub.f32 0.0, %v73_v32  ;;  %v72_v36 = vmul.f32 %v70_v33, %v70_v33  ;;  %v56_v37 = vmul.f32 %v54_v34, %v54_v34 }
  0x94   :  { %v77_v38 = vmul.f32 8.491059, %v75_v35  ;;  %v74_v39 = vadd.f32 %v72_v36, %v56_v37 }
  0x96   :  { %v76_v40 = vsub.f32 0.0, %v74_v39  ;;  %v79_v41 = vmul.f32 1.442695, %v77_v38 }
  0x98   :  { %v78_v42 = vmul.f32 8.491059, %v76_v40  ;;  %200 = vpow2.f32 %v79_v41 }
  0x9a   :  { %v81_v43 = vmul.f32 1.442695, %v78_v42 }
  0x9c   :  { %202 = vpow2.f32 %v81_v43 }
  0xa5   :  { %v201_v44 = vpop.eup %200 }
  0xa9   :  { %v203_v45 = vpop.eup %202 }
  0xaa   :  { %v85_v46 = vpack.c.bf16 %v203_v45, %v201_v44 }
  0xac   :  { %186 = vmatmul.mubr.msk.bf16.vlgmr.msra.gmra.mxu0 %vm98_vm1, %v85_v46 }
 0x16c   :  { %v136_v47 = vpop.f32.mrf.mxu0 }
 0x16d   :  { %152 = vst [vmem:[#allocation6] sm:$0xff] %v136_v47 }
 0x16e   :  { %v187_v48 = vpop.f32.mrf.mxu0 }
 0x170   :  { %v139_v49 = vpop.f32.mrf.mxu0 }
 0x171   :  { %153 = vst [vmem:[#allocation6 + $0x8] sm:$0xff] %v139_v49 }
 0x172   :  { %v188_v50 = vpop.f32.mrf.mxu0 }
 0x173   :  { %235 = shalt.err (!%p232_p9)
}
 0x174   :  { %165 = dma.vmem_to_hbm [thread:$0]  %s160_s23, 256, %s300_s3, [#allocation5], %s249_s15, %s249_s15, %s250_s16  }
 0x175   :  { %246 = dma.done.wait [#allocation5], 256  }
 0x176   :  { %247 = vsyncadd [#allocation5], 4294967040 }
 0x177   :  { %169 = vsyncpa [#allocation4], 1 }
 0x178   :  { %170 = vsyncpa [#allocation5], 1 }

</bundles_post_ra>
